<compile_context>
chip_gen: v7x
topology: tpu7x:2x2x1
jax: 0.10.0
libtpu: 0.0.40
codegen_flags: <defaults>
</compile_context>

<pallas_src>
import functools

import jax
import jax.numpy as jnp
from jax.experimental import pallas as pl
from jax.experimental.pallas import tpu as pltpu


def _mlp_kernel(x_ref, w_in_ref, b_in_ref, w_hid_ref, b_hid_ref, w_out_ref,
                o_ref, *, layers_num, input_dim):
    # x: (input_dim, tile) -- batch on lanes.
    x = x_ref[...]

    # Input MLPBlock: Linear + Tanh.  K == input_dim is tiny (e.g. 2), so skip
    # the MXU and do VPU broadcast multiply-adds:
    #   acc = b + sum_k  W[:, k] (col) * x[k, :] (row)
    acc = b_in_ref[...]                                   # (hidden, 1)
    for k in range(input_dim):                            # static unroll
        acc = acc + w_in_ref[:, k:k + 1] * x[k:k + 1, :]  # -> (hidden, tile)
    h = jnp.tanh(acc)

    # Hidden MLPBlocks: (H, H) @ (H, tile) on the MXU, f32 accumulation.
    # layers_num is small (3) -> static unroll keeps full scheduler visibility.
    # TODO(synk): switch to lax.fori_loop with dynamic w_hid_ref[l] indexing if
    # layers_num ever grows beyond a handful (static unroll inflates code size
    # and does not bound live ranges).
    for l in range(layers_num):
        h = jnp.tanh(
            jnp.dot(w_hid_ref[l], h, preferred_element_type=jnp.float32)
            + b_hid_ref[l]
        )

    # Output layer (bias=False): (output_dim, H) @ (H, tile) -> lane-dense.
    o_ref[...] = jnp.dot(w_out_ref[...], h, preferred_element_type=jnp.float32)


def _auto_batch_tile(B, max_tile=8192):
    """Largest useful tile: ~ceil(B/2) rounded up to a lane multiple (>=128),
    capped so VMEM stays tiny even on v7x's 64 MiB.  For B >= 256 this yields
    an even number of grid steps (one per v7x TensorCore)."""
    half = -(-B // 2)                     # ceil(B / 2)
    tile = 128 * (-(-half // 128))        # round up to multiple of 128
    return max(128, min(max_tile, tile))


def backbone_net_forward(x, params, *, batch_tile=None):
    """x: (B, input_dim) float32 -> (B, output_dim) float32."""
    w_in, b_in, w_hid, b_hid, w_out = params
    B, input_dim = x.shape
    hidden_dim = w_in.shape[0]
    output_dim = w_out.shape[0]
    layers_num = w_hid.shape[0]

    if batch_tile is None:
        batch_tile = _auto_batch_tile(B)
    num_tiles = pl.cdiv(B, batch_tile)
    B_pad = num_tiles * batch_tile

    # Batch goes to the lane axis.  Zero-padding is benign: padded columns
    # produce tanh(bias) garbage that is sliced off below.  jnp.pad (not
    # zeros+scatter) so XLA can fuse it; the (B,2)->(2,B) transpose is tiny.
    x_t = jnp.pad(x.T.astype(jnp.float32), ((0, 0), (0, B_pad - B)))

    kernel = functools.partial(
        _mlp_kernel, layers_num=int(layers_num), input_dim=int(input_dim))

    out_t = pl.pallas_call(
        kernel,
        out_shape=jax.ShapeDtypeStruct((output_dim, B_pad), jnp.float32),
        grid_spec=pltpu.PrefetchScalarGridSpec(
            num_scalar_prefetch=0,
            grid=(num_tiles,),
            in_specs=[
                # activations: (input_dim, batch_tile), tiled over batch/lanes
                pl.BlockSpec((input_dim, batch_tile), lambda i: (0, i)),
                # weights / biases: full blocks, resident for every grid step
                # (constant index_map -> fetched once; ~13 KiB total at H=32,
                # so the default double-buffer allocation is negligible)
                pl.BlockSpec((hidden_dim, input_dim), lambda i: (0, 0)),
                pl.BlockSpec((hidden_dim, 1), lambda i: (0, 0)),
                pl.BlockSpec((layers_num, hidden_dim, hidden_dim),
                             lambda i: (0, 0, 0)),
                pl.BlockSpec((layers_num, hidden_dim, 1),
                             lambda i: (0, 0, 0)),
                pl.BlockSpec((output_dim, hidden_dim), lambda i: (0, 0)),
            ],
            # lane-dense output: (output_dim, batch_tile)
            out_specs=pl.BlockSpec((output_dim, batch_tile), lambda i: (0, i)),
        ),
        compiler_params=pltpu.CompilerParams(
            dimension_semantics=("parallel",)),
    )(x_t, w_in, b_in, w_hid, b_hid, w_out)

    # Drop batch padding; (output_dim, B) -> (B, output_dim) is layout-trivial
    # for output_dim == 1.
    return out_t[:, :B].T


def init_params(key, input_dim, hidden_dim, output_dim, layers_num):
    """Deterministic init mimicking nn.Linear's U(-1/sqrt(fan_in), +...).

    Weights use the PyTorch (out_features, in_features) layout; biases are
    stored as (out_features, 1) columns to match the transposed activations.
    """
    ks = jax.random.split(key, 5)

    def uni(k, shape, fan_in):
        bound = 1.0 / jnp.sqrt(jnp.float32(fan_in))
        return jax.random.uniform(k, shape, jnp.float32, -bound, bound)

    w_in = uni(ks[0], (hidden_dim, input_dim), input_dim)
    b_in = uni(ks[1], (hidden_dim, 1), input_dim)
    w_hid = uni(ks[2], (layers_num, hidden_dim, hidden_dim), hidden_dim)
    b_hid = uni(ks[3], (layers_num, hidden_dim, 1), hidden_dim)
    w_out = uni(ks[4], (output_dim, hidden_dim), hidden_dim)  # bias=False
    return (w_in, b_in, w_hid, b_hid, w_out)


def reference_forward(x, params):
    """Pure-JAX reference in the usual row-major (batch, features) layout."""
    w_in, b_in, w_hid, b_hid, w_out = params
    hi = jax.lax.Precision.HIGHEST
    h = jnp.tanh(jnp.dot(x, w_in.T, precision=hi) + b_in.T)
    for l in range(w_hid.shape[0]):
        h = jnp.tanh(jnp.dot(h, w_hid[l].T, precision=hi) + b_hid[l].T)
    return jnp.dot(h, w_out.T, precision=hi)


if __name__ == "__main__":
    # Config consistent with the 1D longitudinal-vibration inverse PINN:
    # inputs (x, t) -> scalar displacement, batch = collocation points.
    input_dim, hidden_dim, output_dim, layers_num = 2, 32, 1, 3
    batch = 1000   # non-multiple of 128: exercises the pad/slice path;
                   # auto batch_tile -> 512, i.e. 2 "parallel" grid steps
                   # (one per v7x TensorCore; harmless on 1-TC v5e/v6e)

    key = jax.random.PRNGKey(0)
    k_x, k_p = jax.random.split(key)
    x = jax.random.normal(k_x, (batch, input_dim), jnp.float32)
    params = init_params(k_p, input_dim, hidden_dim, output_dim, layers_num)

    out = backbone_net_forward(x, params)
    out = jax.block_until_ready(out)

    ref = reference_forward(x, params)
    assert out.shape == (batch, output_dim)
    assert jnp.allclose(out, ref, atol=2e-5, rtol=1e-5), "mismatch vs reference"

    print("KERNEL_OK")
</pallas_src>

<mosaic_0001>
module attributes {stable_mosaic.version = 11 : i64} {
  func.func @_mlp_kernel(%arg0: i32, %arg1: memref<2x512xf32, #tpu.memory_space<vmem>>, %arg2: memref<32x2xf32, #tpu.memory_space<vmem>>, %arg3: memref<32x1xf32, #tpu.memory_space<vmem>>, %arg4: memref<3x32x32xf32, #tpu.memory_space<vmem>>, %arg5: memref<3x32x1xf32, #tpu.memory_space<vmem>>, %arg6: memref<1x32xf32, #tpu.memory_space<vmem>>, %arg7: memref<1x512xf32, #tpu.memory_space<vmem>>) attributes {dimension_semantics = [#tpu.dimension_semantics<parallel>], iteration_bounds = array<i64: 2>, scalar_prefetch = 0 : i64, scratch_operands = 0 : i64, tpu.core_type = #tpu.core_type<tc>, window_params = [{transform_indices = @transform_0, window_bounds = array<i64: 2, 512>}, {pipeline_mode = #tpu.pipeline_mode<synchronous>, transform_indices = @transform_1, window_bounds = array<i64: 32, 2>}, {pipeline_mode = #tpu.pipeline_mode<synchronous>, transform_indices = @transform_2, window_bounds = array<i64: 32, 1>}, {pipeline_mode = #tpu.pipeline_mode<synchronous>, transform_indices = @transform_3, window_bounds = array<i64: 3, 32, 32>}, {pipeline_mode = #tpu.pipeline_mode<synchronous>, transform_indices = @transform_4, window_bounds = array<i64: 3, 32, 1>}, {pipeline_mode = #tpu.pipeline_mode<synchronous>, transform_indices = @transform_5, window_bounds = array<i64: 1, 32>}, {transform_indices = @transform_6, window_bounds = array<i64: 1, 512>}]} {
    %c0 = arith.constant 0 : index
    %c0_0 = arith.constant 0 : index
    %0 = vector.load %arg1[%c0, %c0_0] : memref<2x512xf32, #tpu.memory_space<vmem>>, vector<2x512xf32>
    %c0_1 = arith.constant 0 : index
    %c0_2 = arith.constant 0 : index
    %1 = vector.load %arg3[%c0_1, %c0_2] : memref<32x1xf32, #tpu.memory_space<vmem>>, vector<32x1xf32>
    %c0_3 = arith.constant 0 : index
    %c0_4 = arith.constant 0 : index
    %2 = vector.load %arg2[%c0_3, %c0_4] : memref<32x2xf32, #tpu.memory_space<vmem>>, vector<32x1xf32>
    %3 = vector.extract_strided_slice %0 {offsets = [0, 0], sizes = [1, 512], strides = [1, 1]} : vector<2x512xf32> to vector<1x512xf32>
    %4 = vector.broadcast %2 : vector<32x1xf32> to vector<32x512xf32>
    %5 = vector.broadcast %3 : vector<1x512xf32> to vector<32x512xf32>
    %6 = arith.mulf %4, %5 : vector<32x512xf32>
    %7 = vector.broadcast %1 : vector<32x1xf32> to vector<32x512xf32>
    %8 = arith.addf %7, %6 : vector<32x512xf32>
    %c0_5 = arith.constant 0 : index
    %c1 = arith.constant 1 : index
    %9 = vector.load %arg2[%c0_5, %c1] : memref<32x2xf32, #tpu.memory_space<vmem>>, vector<32x1xf32>
    %10 = vector.extract_strided_slice %0 {offsets = [1, 0], sizes = [1, 512], strides = [1, 1]} : vector<2x512xf32> to vector<1x512xf32>
    %11 = vector.broadcast %9 : vector<32x1xf32> to vector<32x512xf32>
    %12 = vector.broadcast %10 : vector<1x512xf32> to vector<32x512xf32>
    %13 = arith.mulf %11, %12 : vector<32x512xf32>
    %14 = arith.addf %8, %13 : vector<32x512xf32>
    %15 = math.tanh %14 : vector<32x512xf32>
    %c0_6 = arith.constant 0 : index
    %c0_7 = arith.constant 0 : index
    %c0_8 = arith.constant 0 : index
    %16 = vector.load %arg4[%c0_6, %c0_7, %c0_8] : memref<3x32x32xf32, #tpu.memory_space<vmem>>, vector<1x32x32xf32>
    %17 = vector.shape_cast %16 : vector<1x32x32xf32> to vector<32x32xf32>
    %cst = arith.constant dense<0.000000e+00> : vector<32x512xf32>
    %18 = tpu.matmul %17, %15, %cst {dimension_numbers = #tpu.dot_dimension_numbers<[1], [0], [0], [1], [0, 0, 1, 1], [], []>} : vector<32x32xf32>, vector<32x512xf32>, vector<32x512xf32> -> vector<32x512xf32>
    %c0_9 = arith.constant 0 : index
    %c0_10 = arith.constant 0 : index
    %c0_11 = arith.constant 0 : index
    %19 = vector.load %arg5[%c0_9, %c0_10, %c0_11] : memref<3x32x1xf32, #tpu.memory_space<vmem>>, vector<1x32x1xf32>
    %20 = vector.shape_cast %19 : vector<1x32x1xf32> to vector<32x1xf32>
    %21 = vector.broadcast %20 : vector<32x1xf32> to vector<32x512xf32>
    %22 = arith.addf %18, %21 : vector<32x512xf32>
    %23 = math.tanh %22 : vector<32x512xf32>
    %c1_12 = arith.constant 1 : index
    %c0_13 = arith.constant 0 : index
    %c0_14 = arith.constant 0 : index
    %24 = vector.load %arg4[%c1_12, %c0_13, %c0_14] : memref<3x32x32xf32, #tpu.memory_space<vmem>>, vector<1x32x32xf32>
    %25 = vector.shape_cast %24 : vector<1x32x32xf32> to vector<32x32xf32>
    %cst_15 = arith.constant dense<0.000000e+00> : vector<32x512xf32>
    %26 = tpu.matmul %25, %23, %cst_15 {dimension_numbers = #tpu.dot_dimension_numbers<[1], [0], [0], [1], [0, 0, 1, 1], [], []>} : vector<32x32xf32>, vector<32x512xf32>, vector<32x512xf32> -> vector<32x512xf32>
    %c1_16 = arith.constant 1 : index
    %c0_17 = arith.constant 0 : index
    %c0_18 = arith.constant 0 : index
    %27 = vector.load %arg5[%c1_16, %c0_17, %c0_18] : memref<3x32x1xf32, #tpu.memory_space<vmem>>, vector<1x32x1xf32>
    %28 = vector.shape_cast %27 : vector<1x32x1xf32> to vector<32x1xf32>
    %29 = vector.broadcast %28 : vector<32x1xf32> to vector<32x512xf32>
    %30 = arith.addf %26, %29 : vector<32x512xf32>
    %31 = math.tanh %30 : vector<32x512xf32>
    %c2 = arith.constant 2 : index
    %c0_19 = arith.constant 0 : index
    %c0_20 = arith.constant 0 : index
    %32 = vector.load %arg4[%c2, %c0_19, %c0_20] : memref<3x32x32xf32, #tpu.memory_space<vmem>>, vector<1x32x32xf32>
    %33 = vector.shape_cast %32 : vector<1x32x32xf32> to vector<32x32xf32>
    %cst_21 = arith.constant dense<0.000000e+00> : vector<32x512xf32>
    %34 = tpu.matmul %33, %31, %cst_21 {dimension_numbers = #tpu.dot_dimension_numbers<[1], [0], [0], [1], [0, 0, 1, 1], [], []>} : vector<32x32xf32>, vector<32x512xf32>, vector<32x512xf32> -> vector<32x512xf32>
    %c2_22 = arith.constant 2 : index
    %c0_23 = arith.constant 0 : index
    %c0_24 = arith.constant 0 : index
    %35 = vector.load %arg5[%c2_22, %c0_23, %c0_24] : memref<3x32x1xf32, #tpu.memory_space<vmem>>, vector<1x32x1xf32>
    %36 = vector.shape_cast %35 : vector<1x32x1xf32> to vector<32x1xf32>
    %37 = vector.broadcast %36 : vector<32x1xf32> to vector<32x512xf32>
    %38 = arith.addf %34, %37 : vector<32x512xf32>
    %39 = math.tanh %38 : vector<32x512xf32>
    %c0_25 = arith.constant 0 : index
    %c0_26 = arith.constant 0 : index
    %40 = vector.load %arg6[%c0_25, %c0_26] : memref<1x32xf32, #tpu.memory_space<vmem>>, vector<1x32xf32>
    %cst_27 = arith.constant dense<0.000000e+00> : vector<1x512xf32>
    %41 = tpu.matmul %40, %39, %cst_27 {dimension_numbers = #tpu.dot_dimension_numbers<[1], [0], [0], [1], [0, 0, 1, 1], [], []>} : vector<1x32xf32>, vector<32x512xf32>, vector<1x512xf32> -> vector<1x512xf32>
    %c0_28 = arith.constant 0 : index
    %c0_29 = arith.constant 0 : index
    %42 = vector.load %arg7[%c0_28, %c0_29] : memref<1x512xf32, #tpu.memory_space<vmem>>, vector<1x512xf32>
    tpu.vector_store %arg7[%c0_28, %c0_29], %41 {strides = array<i32>} : memref<1x512xf32, #tpu.memory_space<vmem>>, vector<1x512xf32>,
    return
  }
  func.func @transform_0(%arg0: i32) -> (i32, i32) {
    %c0_i32 = arith.constant 0 : i32
    %c0_i32_0 = arith.constant 0 : i32
    return %c0_i32, %arg0 : i32, i32
  }
  func.func @transform_1(%arg0: i32) -> (i32, i32) {
    %c0_i32 = arith.constant 0 : i32
    %c0_i32_0 = arith.constant 0 : i32
    %c0_i32_1 = arith.constant 0 : i32
    return %c0_i32, %c0_i32_0 : i32, i32
  }
  func.func @transform_2(%arg0: i32) -> (i32, i32) {
    %c0_i32 = arith.constant 0 : i32
    %c0_i32_0 = arith.constant 0 : i32
    %c0_i32_1 = arith.constant 0 : i32
    return %c0_i32, %c0_i32_0 : i32, i32
  }
  func.func @transform_3(%arg0: i32) -> (i32, i32, i32) {
    %c0_i32 = arith.constant 0 : i32
    %c0_i32_0 = arith.constant 0 : i32
    %c0_i32_1 = arith.constant 0 : i32
    %c0_i32_2 = arith.constant 0 : i32
    return %c0_i32, %c0_i32_0, %c0_i32_1 : i32, i32, i32
  }
  func.func @transform_4(%arg0: i32) -> (i32, i32, i32) {
    %c0_i32 = arith.constant 0 : i32
    %c0_i32_0 = arith.constant 0 : i32
    %c0_i32_1 = arith.constant 0 : i32
    %c0_i32_2 = arith.constant 0 : i32
    return %c0_i32, %c0_i32_0, %c0_i32_1 : i32, i32, i32
  }
  func.func @transform_5(%arg0: i32) -> (i32, i32) {
    %c0_i32 = arith.constant 0 : i32
    %c0_i32_0 = arith.constant 0 : i32
    %c0_i32_1 = arith.constant 0 : i32
    return %c0_i32, %c0_i32_0 : i32, i32
  }
  func.func @transform_6(%arg0: i32) -> (i32, i32) {
    %c0_i32 = arith.constant 0 : i32
    %c0_i32_0 = arith.constant 0 : i32
    return %c0_i32, %arg0 : i32, i32
  }
}

</mosaic_0001>

<bundles_post_ra>
// kernel: tpu_custom_call.1
= control target key start
LH: loop header
LB: loop body
LE: loop exit
PB: predicated region body
PF: predicated region fallthrough
CT: control target
= control target key end

     0   :  { %11 = vsyncpa [#allocation3], 0  ;;  %s2145_s0 = inlined_call_operand.vmem [shape: f32[2,1024], index: 0, kind: input, shape index: {}]   ;;  %s2146_s1 = inlined_call_operand.vmem [shape: f32[32,2], index: 1, kind: input, shape index: {}]   ;;  %s2147_s2 = inlined_call_operand.vmem [shape: f32[32,1], index: 2, kind: input, shape index: {}]   ;;  %s2148_s3 = inlined_call_operand.vmem [shape: f32[3,32,32], index: 3, kind: input, shape index: {}]   ;;  %s2149_s4 = inlined_call_operand.vmem [shape: f32[3,32,1], index: 4, kind: input, shape index: {}]   ;;  %s2150_s5 = inlined_call_operand.vmem [shape: f32[1,32], index: 5, kind: input, shape index: {}]   ;;  %s2151_s6 = inlined_call_operand.hbm [shape: f32[1,1024], index: 6, kind: output, shape index: {}]  }
   0x1   :  { %13 = vsyncpa [#allocation3 + $0x1], 0  ;;  %s1834_s21 = smov 0   ;;  %s1836_s22 = smov 0  }
   0x2   :  { %s1838_s23 = smov 0   ;;  %s1840_s24 = smov 0  }
   0x3 LB: > { %s1855_s25 = sadd.s32 4294967295, %s1792_s24   ;;  %s1432_s26 = sadd.s32 4294967294, %s1792_s24   ;;  %s1792_s24 = sphi %s1840_s24, %s2157_s24   ;;  %s1788_s23 = sphi %s1838_s23, %s2156_s23   ;;  %s1784_s22 = sphi %s1836_s22, %s2155_s22   ;;  %s1780_s21 = sphi %s1834_s21, %s2154_s21  }
   0x4   : > { %s1859_s27 = sadd.s32 1, %s1792_s24   ;;  %s157_s28 = sadd.s32 1, %s1788_s23 }
   0x5   : > { %s154_s29 = ssub.s32 %s1792_s24, %s1859_s27  ;;  %p167_p0 = scmp.ne.s32.totalorder %s1788_s23, %s1784_s22 }
   0x6   : > { %p155_p1 = scmp.eq.s32.totalorder %s154_s29, 0  ;;  %p168_p2 = scmp.eq.s32.totalorder %s1855_s25, 1 }
   0x7   : > { %p173_p3 = scmp.ne.s32.totalorder %s1784_s22, %s1780_s21  ;;  %p174_p4 = scmp.eq.s32.totalorder %s1432_s26, 1 }
   0x8   : > { %s1870_s30 = scalar_select %p155_p1, %s1788_s23, %s157_s28  }
   0x9   : > { %p1872_p5 = por %p168_p2, %p167_p0  ;;  %p1876_p6 = por %p174_p4, %p173_p3 }
   0xa   : > { %p1435_p7 = scmp.ge.s32.totalorder %s1792_s24, 1  ;;  %p216_p8 = scmp.lt.s32.totalorder %s1792_s24, 3 }
   0xc   : > { %p217_p9 = pnand %p1435_p7, %p216_p8 }
   0xd   : > { %v258_v0 = vld [vmem:[%s2146_s1] sm:$0xff] (!%p217_p9)  ;;  %v1794_v2 = vmov (!%p217_p9), 0   ;;  %v259_v3 = vld [vmem:[%s2146_s1 + $0x8] sm:$0xff] (!%p217_p9)  ;;  %v261_v5 = vld [vmem:[%s2146_s1 + $0x18] sm:$0xff] (!%p217_p9)  ;;  %v1795_v6 = vmov (!%p217_p9), 1   ;;  %v1796_v10 = vmov (!%p217_p9), 0.0   ;;  %v283_v23 = vlaneseq (!%p217_p9) }
   0xe   : > { %220 = sbr.rel (%p217_p9) target bundleno = 1161 (0x489), region = 44  ;;  %v254_v1 = vld [vmem:[%s2147_s2] sm:$0xff] (!%p217_p9)  ;;  %1595 = vset.pattern.permute.xlu1 (!%p217_p9), %v1794_v2  ;;  %1594 = vset.pattern.permute.xlu0 (!%p217_p9), %v1794_v2  ;;  %v255_v4 = vld [vmem:[%s2147_s2 + $0x8] sm:$0xff] (!%p217_p9)  ;;  %v260_v7 = vld [vmem:[%s2146_s1 + $0x10] sm:$0xff] (!%p217_p9)  ;;  %s1437_s19 = sshll.u32 (!%p217_p9), %s1855_s25, 2  ;;  %vm499_vm0 = vcmask (!%p217_p9), 261120  }
   0xf   : > { %264 = vperm.xlu0 (!%p217_p9), %1594, %v258_v0   ;;  %337 = vperm.xlu1 (!%p217_p9), %1595, %v254_v1   ;;  %v256_v8 = vld [vmem:[%s2147_s2 + $0x10] sm:$0xff] (!%p217_p9)  ;;  %v257_v9 = vld [vmem:[%s2147_s2 + $0x18] sm:$0xff] (!%p217_p9)  ;;  %v475_v11 = vld [vmem:[%s2149_s4] sm:$0xff] (!%p217_p9)  ;;  %p247_p10 = scmp.lt.s32.totalorder (!%p217_p9), %s1437_s19, 7  ;;  %v1946_v24 = vshrl.u32 (!%p217_p9), %v283_v23, 7  ;;  %s1486_s28 = sshll.u32 (!%p217_p9), %s1855_s25, 6 }
  0x10   : > { %576 = vmatprep.mubr.f32.mxu0 (!%p217_p9), %v1796_v10  ;;  %665 = vmatprep.mubr.f32.mxu1 (!%p217_p9), %v1796_v10  ;;  %v476_v12 = vld [vmem:[%s2149_s4 + $0x8] sm:$0xff] (!%p217_p9)  ;;  %v477_v13 = vld [vmem:[%s2149_s4 + $0x10] sm:$0xff] (!%p217_p9)  ;;  %v1451_v14 = vld [vmem:[%s2149_s4 + $0x20] sm:$0xff] (!%p217_p9)  ;;  %vm1355_vm1 = vcmp.lt.s32.totalorder (!%p217_p9), %v283_v23, 512  ;;  %s2103_s12 = scalar_lea.hbm (!%p217_p9), %s2151_s6, %s1486_s28  ;;  %s1798_s25 = smov (!%p217_p9), [#allocation2]  }
  0x11   : > { %v478_v15 = vld [vmem:[%s2149_s4 + $0x18] sm:$0xff] (!%p217_p9)  ;;  %v1453_v16 = vld [vmem:[%s2149_s4 + $0x30] sm:$0xff] (!%p217_p9)  ;;  %v1452_v17 = vld [vmem:[%s2149_s4 + $0x28] sm:$0xff] (!%p217_p9)  ;;  %v285_v25 = vsub.s32 (!%p217_p9), 0, %v1946_v24  ;;  %v289_v26 = vsub.s32 (!%p217_p9), 2, %v1946_v24  ;;  %v293_v27 = vsub.s32 (!%p217_p9), 4, %v1946_v24 }
  0x12   : > { %v1467_v18 = vld [vmem:[%s2149_s4 + $0x40] sm:$0xff] (!%p217_p9)  ;;  %v1454_v19 = vld [vmem:[%s2149_s4 + $0x38] sm:$0xff] (!%p217_p9)  ;;  %v1469_v20 = vld [vmem:[%s2149_s4 + $0x50] sm:$0xff] (!%p217_p9)  ;;  %v297_v29 = vsub.s32 (!%p217_p9), 6, %v1946_v24  ;;  %v389_v30 = vsub.s32 (!%p217_p9), 1, %v1946_v24  ;;  %v393_v31 = vsub.s32 (!%p217_p9), 3, %v1946_v24 }
  0x13   : > { %269 = vperm.xlu0 (!%p217_p9), %1594, %v259_v3   ;;  %342 = vperm.xlu1 (!%p217_p9), %1595, %v255_v4   ;;  %v1468_v21 = vld [vmem:[%s2149_s4 + $0x48] sm:$0xff] (!%p217_p9)  ;;  %v1470_v22 = vld [vmem:[%s2149_s4 + $0x58] sm:$0xff] (!%p217_p9)  ;;  %v397_v32 = vsub.s32 (!%p217_p9), 5, %v1946_v24  ;;  %v401_v33 = vsub.s32 (!%p217_p9), 7, %v1946_v24  ;;  %s1734_s15 = sshll.u32 (!%p217_p9), %s1798_s25, 4  ;;  %s1735_s15 = int_to_ptr.vmem [resolvable:$false] %s1734_s15 }
  0x14   : > { %s1736_s16 = scalar_lea.vmem (!%p217_p9), %s1735_s15, 128 }
  0x15   : > { %s2159_s19 = smov (!%p247_p10, %s1437_s19), 7 }
  0x16   : > { %s1438_s20 = sshll.u32 %s2159_s19, 1 }
  0x17   : > { %279 = vperm.xlu0 %1594, %v261_v5   ;;  %1596 = vset.pattern.permute.xlu1 %v1795_v6  ;;  %s250_s29 = scalar_lea.vmem %s2145_s0, %s1438_s20  ;;  %s243_s20 = sand.u32 1, %s1784_s22  }
  0x18   : > { %376 = vperm.xlu1 %1596, %v259_v3   ;;  %v253_v28 = vld [vmem:[%s250_s29] sm:$0xff]  ;;  %s1436_s26 = sshll.u32 %s243_s20, 2  ;;  %s1359_s13 = scalar_lea.sflag [#allocation3], %s243_s20 }
  0x19   : > { %v286_v34 = vrot.slane %v253_v28, %v285_v25  ;;  %v290_v35 = vrot.slane %v253_v28, %v289_v26  ;;  %v294_v36 = vrot.slane %v253_v28, %v293_v27  ;;  %v298_v39 = vrot.slane %v253_v28, %v297_v29  ;;  %s245_s29 = scalar_lea.vmem [#allocation2], %s1436_s26 }
  0x1a   : > { %v390_v40 = vrot.slane %v253_v28, %v389_v30  ;;  %v394_v41 = vrot.slane %v253_v28, %v393_v31  ;;  %v398_v42 = vrot.slane %v253_v28, %v397_v32  ;;  %v402_v43 = vrot.slane %v253_v28, %v401_v33  ;;  %s1373_s9 = sshll.u32 %s245_s29, 4  ;;  %s2105_s9 = int_to_ptr.vmem [resolvable:$true] %s1373_s9 }
  0x1b   : > { %1598 = vset.pattern.permute.xlu0 %v1795_v6  ;;  %v1959_v44 = vrot.slane %v286_v34, %v285_v25  ;;  %v1961_v45 = vrot.slane %v290_v35, %v285_v25  ;;  %v1963_v46 = vrot.slane %v294_v36, %v285_v25  ;;  %v1965_v49 = vrot.slane %v298_v39, %v285_v25  ;;  %s1730_s14 = scalar_lea.vmem %s2105_s9, 64  ;;  %p1737_p0 = scmp.lt.s32.totalorder %s2105_s9, %s1735_s15 }
  0x1c   : > { %372 = vperm.xlu0 %1598, %v258_v0   ;;  %1597 = vset.pattern.permute.xlu1 %v1794_v2  ;;  %v1970_v53 = vrot.slane %v390_v40, %v389_v30  ;;  %v1972_v54 = vrot.slane %v394_v41, %v389_v30  ;;  %v1974_v55 = vrot.slane %v398_v42, %v389_v30  ;;  %p1731_p11 = scmp.ne.s32.totalorder %s2105_s9, %s1730_s14  ;;  %p1738_p1 = scmp.lt.s32.totalorder %s1736_s16, %s1730_s14 }
  0x1d   : > { %274 = vperm.xlu1 %1597, %v260_v7   ;;  %v1976_v56 = vrot.slane %v402_v43, %v389_v30 }
  0x1e   : > { %p1732_p12 = pnand %p1731_p11, %p1872_p5  ;;  %p1739_p2 = por %p1738_p1, %p1737_p0 }
  0x20   : > { %380 = vperm.xlu0 %1598, %v260_v7   ;;  %p1733_p13 = pneg %p1732_p12 }
  0x21   : > { %347 = vperm.xlu1 %1597, %v256_v8  }
  0x22   : > { %p1740_p3 = pnand %p1739_p2, %p1733_p13 }
  0x24   : > { %1601 = vset.pattern.permute.xlu0 %v1794_v2 }
  0x25   : > { %352 = vperm.xlu1 %1597, %v257_v9   ;;  %486 = vperm.xlu0 %1601, %v476_v12  }
  0x29   : > { %1599 = vset.pattern.permute.xlu1 %v1795_v6  ;;  %718 = vperm.xlu0 %1601, %v1451_v14  }
  0x2a   : > { %384 = vperm.xlu1 %1599, %v261_v5  }
  0x2d   : > { %728 = vperm.xlu0 %1601, %v1453_v16  }
  0x2e   : > { %1600 = vset.pattern.permute.xlu1 %v1794_v2 }
  0x2f   : > { %481 = vperm.xlu1 %1600, %v475_v11  }
  0x31   : > { %954 = vperm.xlu0 %1601, %v1467_v18  }
  0x33   : > { %491 = vperm.xlu1 %1600, %v477_v13  }
  0x35   : > { %964 = vperm.xlu0 %1601, %v1469_v20  }
  0x37   : > { %496 = vperm.xlu1 %1600, %v478_v15  }
  0x3b   : > { %723 = vperm.xlu1 %1600, %v1452_v17  }
  0x3f   : > { %733 = vperm.xlu1 %1600, %v1454_v19  }
  0x43   : > { %959 = vperm.xlu1 %1600, %v1468_v21  }
  0x47   : > { %969 = vperm.xlu1 %1600, %v1470_v22  }
  0x8e   : > { %v265_v37 = vpop.permute.xlu0 %264  ;;  %v338_v38 = vpop.permute.xlu1 %337 }
  0x8f   : > { %v319_v58 = vmul.f32 %v1959_v44, %v265_v37  ;;  %v320_v59 = vmul.f32 %v1961_v45, %v265_v37  ;;  %v321_v61 = vmul.f32 %v1963_v46, %v265_v37  ;;  %v322_v6 = vmul.f32 %v1965_v49, %v265_v37 }
  0x91   : > { %v355_v12 = vadd.f32 %v338_v38, %v319_v58  ;;  %v356_v13 = vadd.f32 %v338_v38, %v320_v59  ;;  %v357_v14 = vadd.f32 %v338_v38, %v321_v61  ;;  %v358_v21 = vadd.f32 %v338_v38, %v322_v6 }
  0x92   : > { %v270_v47 = vpop.permute.xlu0 %269  ;;  %v343_v48 = vpop.permute.xlu1 %342 }
  0x93   : > { %v323_v50 = vmul.f32 %v1959_v44, %v270_v47  ;;  %v324_v51 = vmul.f32 %v1961_v45, %v270_v47  ;;  %v325_v52 = vmul.f32 %v1963_v46, %v270_v47  ;;  %v326_v57 = vmul.f32 %v1965_v49, %v270_v47 }
  0x95   : > { %v359_v62 = vadd.f32 %v343_v48, %v323_v50  ;;  %v360_v63 = vadd.f32 %v343_v48, %v324_v51  ;;  %v361_v0 = vadd.f32 %v343_v48, %v325_v52  ;;  %v362_v7 = vadd.f32 %v343_v48, %v326_v57 }
  0x96   : > { %v280_v60 = vpop.permute.xlu0 %279 }
  0x97   : > { %v377_v1 = vpop.permute.xlu1 %376  ;;  %v331_v52 = vmul.f32 %v1959_v44, %v280_v60  ;;  %v332_v57 = vmul.f32 %v1961_v45, %v280_v60  ;;  %v333_v58 = vmul.f32 %v1963_v46, %v280_v60 }
  0x98   : > { %v427_v2 = vmul.f32 %v1970_v53, %v377_v1  ;;  %v428_v3 = vmul.f32 %v1972_v54, %v377_v1  ;;  %v429_v4 = vmul.f32 %v1974_v55, %v377_v1  ;;  %v430_v5 = vmul.f32 %v1976_v56, %v377_v1 }
  0x9a   : > { %v443_v8 = vadd.f32 %v427_v2, %v359_v62  ;;  %v444_v9 = vadd.f32 %v428_v3, %v360_v63  ;;  %v445_v11 = vadd.f32 %v429_v4, %v361_v0  ;;  %v446_v15 = vadd.f32 %v430_v5, %v362_v7 }
  0x9b   : > { %v373_v16 = vpop.permute.xlu0 %372  ;;  %v334_v62 = vmul.f32 %v1965_v49, %v280_v60 }
  0x9c   : > { %1602 = vtanh.f32 %v443_v8  ;;  %v423_v17 = vmul.f32 %v1970_v53, %v373_v16  ;;  %v424_v18 = vmul.f32 %v1972_v54, %v373_v16  ;;  %v425_v19 = vmul.f32 %v1974_v55, %v373_v16  ;;  %v275_v20 = vpop.permute.xlu1 %274 }
  0x9d   : > { %1604 = vtanh.f32 %v444_v9  ;;  %v426_v22 = vmul.f32 %v1976_v56, %v373_v16  ;;  %v327_v29 = vmul.f32 %v1959_v44, %v275_v20  ;;  %v328_v30 = vmul.f32 %v1961_v45, %v275_v20 }
  0x9e   : > { %1606 = vtanh.f32 %v445_v11  ;;  %v439_v25 = vadd.f32 %v423_v17, %v355_v12  ;;  %v440_v26 = vadd.f32 %v424_v18, %v356_v13  ;;  %v441_v27 = vadd.f32 %v425_v19, %v357_v14 }
  0x9f   : > { %1608 = vtanh.f32 %v446_v15  ;;  %v442_v28 = vadd.f32 %v426_v22, %v358_v21  ;;  %v381_v31 = vpop.permute.xlu0 %380  ;;  %v329_v32 = vmul.f32 %v1963_v46, %v275_v20  ;;  %v330_v38 = vmul.f32 %v1965_v49, %v275_v20 }
  0xa0   : > { %1610 = vtanh.f32 %v439_v25  ;;  %v431_v33 = vmul.f32 %v1970_v53, %v381_v31  ;;  %v348_v34 = vpop.permute.xlu1 %347  ;;  %v432_v35 = vmul.f32 %v1972_v54, %v381_v31  ;;  %v433_v39 = vmul.f32 %v1974_v55, %v381_v31 }
  0xa1   : > { %1612 = vtanh.f32 %v440_v26  ;;  %v363_v36 = vadd.f32 %v348_v34, %v327_v29  ;;  %v364_v37 = vadd.f32 %v348_v34, %v328_v30  ;;  %v365_v40 = vadd.f32 %v348_v34, %v329_v32  ;;  %v472_v29 = vld [vmem:[%s2148_s3 + $0x8] sm:$0xff]  ;;  %v473_v30 = vld [vmem:[%s2148_s3 + $0x10] sm:$0xff] }
  0xa2   : > { %1614 = vtanh.f32 %v441_v27  ;;  %v434_v41 = vmul.f32 %v1976_v56, %v381_v31  ;;  %v366_v42 = vadd.f32 %v348_v34, %v330_v38  ;;  %v474_v31 = vld [vmem:[%s2148_s3 + $0x18] sm:$0xff] }
  0xa3   : > { %1616 = vtanh.f32 %v442_v28  ;;  %v447_v43 = vadd.f32 %v431_v33, %v363_v36  ;;  %v448_v48 = vadd.f32 %v432_v35, %v364_v37  ;;  %v449_v59 = vadd.f32 %v433_v39, %v365_v40  ;;  %v471_v28 = vld [vmem:[%s2148_s3] sm:$0xff] }
  0xa4   : > { %v353_v47 = vpop.permute.xlu1 %352  ;;  %v450_v63 = vadd.f32 %v434_v41, %v366_v42  ;;  %v487_v40 = vpop.permute.xlu0 %486 }
  0xa5   : > { %1618 = vtanh.f32 %v447_v43  ;;  %v367_v1 = vadd.f32 %v353_v47, %v331_v52  ;;  %v368_v2 = vadd.f32 %v353_v47, %v332_v57  ;;  %v369_v3 = vadd.f32 %v353_v47, %v333_v58 }
  0xa6   : > { %v1603_v50 = vpop.eup %1602  ;;  %1620 = vtanh.f32 %v448_v48  ;;  %v370_v49 = vadd.f32 %v353_v47, %v334_v62 }
  0xa7   : > { %v1605_v51 = vpop.eup %1604  ;;  %1622 = vtanh.f32 %v449_v59 }
  0xa8   : > { %v1607_v61 = vpop.eup %1606  ;;  %1624 = vtanh.f32 %v450_v63 }
  0xa9   : > { %v1609_v0 = vpop.eup %1608  ;;  %v385_v4 = vpop.permute.xlu1 %384 }
  0xaa   : > { %v1611_v5 = vpop.eup %1610  ;;  %v435_v6 = vmul.f32 %v1970_v53, %v385_v4  ;;  %v436_v44 = vmul.f32 %v1972_v54, %v385_v4  ;;  %v437_v45 = vmul.f32 %v1974_v55, %v385_v4  ;;  %v438_v46 = vmul.f32 %v1976_v56, %v385_v4 }
  0xab   : > { %v1613_v7 = vpop.eup %1612  ;;  %v1489_v12 = vpack.c.bf16 %v1603_v50, %v1611_v5 }
  0xac   : > { %v1615_v60 = vpop.eup %1614  ;;  %v451_v8 = vadd.f32 %v435_v6, %v367_v1  ;;  %v452_v9 = vadd.f32 %v436_v44, %v368_v2  ;;  %v453_v11 = vadd.f32 %v437_v45, %v369_v3  ;;  %v454_v14 = vadd.f32 %v438_v46, %v370_v49 }
  0xad   : > { %v1617_v13 = vpop.eup %1616  ;;  %v1487_v15 = vpack.c.bf16 %v1605_v51, %v1613_v7  ;;  %v1497_v16 = vpack.c.bf16 %v1607_v61, %v1615_v60 }
  0xae   : > { %1626 = vtanh.f32 %v451_v8  ;;  %v1495_v53 = vpack.c.bf16 %v1609_v0, %v1617_v13  ;;  %v482_v32 = vpop.permute.xlu1 %481 }
  0xaf   : > { %1628 = vtanh.f32 %v452_v9  ;;  %1488 = vmatprep.subr.bf16.mxu0 %v1487_v15  ;;  %v1619_v54 = vpop.eup %1618 }
  0xb0   : > { %1630 = vtanh.f32 %v453_v11  ;;  %1496 = vmatprep.subr.bf16.mxu1 %v1495_v53  ;;  %1490 = vmatpush1.bf16.msra.mxu0 %v1489_v12  ;;  %v1621_v55 = vpop.eup %1620 }
  0xb1   : > { %1632 = vtanh.f32 %v454_v14  ;;  %1498 = vmatpush1.bf16.msra.mxu1 %v1497_v16  ;;  %v1623_v56 = vpop.eup %1622 }
  0xb2   : > { %v1625_v17 = vpop.eup %1624  ;;  %v492_v48 = vpop.permute.xlu1 %491 }
  0xb6   : > { %v497_v3 = vpop.permute.xlu1 %496 }
  0xb8   : > { %v1627_v18 = vpop.eup %1626 }
  0xb9   : > { %v1629_v19 = vpop.eup %1628  ;;  %v1493_v20 = vpack.c.bf16 %v1627_v18, %v1619_v54 }
  0xba   : > { %v1631_v21 = vpop.eup %1630  ;;  %v1491_v22 = vpack.c.bf16 %v1629_v19, %v1621_v55 }
  0xbb   : > { %v1633_v25 = vpop.eup %1632  ;;  %v1501_v26 = vpack.c.bf16 %v1631_v21, %v1623_v56 }
  0xbc   : > { %1492 = vmatprep.subr.bf16.mxu0 %v1491_v22  ;;  %v1499_v27 = vpack.c.bf16 %v1633_v25, %v1625_v17 }
  0xbd   : > { %1494 = vmatpush1.bf16.msra.mxu0 %v1493_v20 }
  0xbe   : > { %1500 = vmatprep.subr.bf16.mxu1 %v1499_v27 }
  0xbf   : > { %1502 = vmatpush1.bf16.msra.mxu1 %v1501_v26 }
  0xc0   : > { %1439 = vmatmul.mubr.msk.f32.vlgmr.msra.gmra.mrb[0].mxu0 %vm499_vm0, %v471_v28 }
  0xc1   : > { %582 = vmatprep.mubr.f32.mxu0 %v1796_v10 }
  0xc2   : > { %1443 = vmatmul.mubr.msk.f32.vlgmr.msra.gmra.mrb[0].mxu1 %vm499_vm0, %v471_v28 }
  0xc3   : > { %671 = vmatprep.mubr.f32.mxu1 %v1796_v10 }
  0xc4   : > { %1440 = vmatmul.mubr.msk.f32.gmra.mrb[2].mxu0 %vm499_vm0, %v472_v29 }
  0xc5   : > { %588 = vmatprep.mubr.f32.mxu0 %v1796_v10 }
  0xc6   : > { %1444 = vmatmul.mubr.msk.f32.gmra.mrb[2].mxu1 %vm499_vm0, %v472_v29 }
  0xc7   : > { %677 = vmatprep.mubr.f32.mxu1 %v1796_v10 }
  0xc8   : > { %1441 = vmatmul.mubr.msk.f32.gmra.mrb[4].mxu0 %vm499_vm0, %v473_v30 }
  0xc9   : > { %594 = vmatprep.mubr.f32.mxu0 %v1796_v10 }
  0xca   : > { %1445 = vmatmul.mubr.msk.f32.gmra.mrb[4].mxu1 %vm499_vm0, %v473_v30 }
  0xcb   : > { %683 = vmatprep.mubr.f32.mxu1 %v1796_v10 }
  0xcc   : > { %1442 = vmatmul.mubr.msk.f32.gmra.mrb[6].mxu0 %vm499_vm0, %v474_v31 }
  0xcd   : > { %812 = vmatprep.mubr.f32.mxu0 %v1796_v10 }
  0xce   : > { %1446 = vmatmul.mubr.msk.f32.gmra.mrb[6].mxu1 %vm499_vm0, %v474_v31  ;;  %v1447_v31 = vld [vmem:[%s2148_s3 + $0x20] sm:$0xff] }
  0xcf   : > { %901 = vmatprep.mubr.f32.mxu1 %v1796_v10 }
 0x193   : > { %v578_v33 = vpop.f32.mrb[0].mxu0 }
 0x194   : > { %v579_v34 = vadd.f32 %v578_v33, %v482_v32  ;;  %v580_v35 = vpop.f32.mrb[1].mxu0  ;;  %v1449_v33 = vld [vmem:[%s2148_s3 + $0x30] sm:$0xff] }
 0x195   : > { %v667_v36 = vpop.f32.mrb[0].mxu1  ;;  %v581_v37 = vadd.f32 %v580_v35, %v482_v32  ;;  %v719_v35 = vpop.permute.xlu0 %718 }
 0x196   : > { %1634 = vtanh.f32 %v579_v34  ;;  %v668_v38 = vadd.f32 %v667_v36, %v482_v32  ;;  %v669_v39 = vpop.f32.mrb[1].mxu1  ;;  %v1450_v34 = vld [vmem:[%s2148_s3 + $0x38] sm:$0xff] }
 0x197   : > { %1636 = vtanh.f32 %v581_v37  ;;  %v670_v41 = vadd.f32 %v669_v39, %v482_v32  ;;  %v584_v42 = vpop.f32.mrb[2].mxu0  ;;  %v1448_v32 = vld [vmem:[%s2148_s3 + $0x28] sm:$0xff] }
 0x198   : > { %1638 = vtanh.f32 %v668_v38  ;;  %v585_v43 = vadd.f32 %v584_v42, %v487_v40  ;;  %v586_v47 = vpop.f32.mrb[3].mxu0 }
 0x199   : > { %1640 = vtanh.f32 %v670_v41  ;;  %v673_v50 = vpop.f32.mrb[2].mxu1  ;;  %v587_v51 = vadd.f32 %v586_v47, %v487_v40 }
 0x19a   : > { %1642 = vtanh.f32 %v585_v43  ;;  %v674_v52 = vadd.f32 %v673_v50, %v487_v40  ;;  %v675_v57 = vpop.f32.mrb[3].mxu1  ;;  %v724_v43 = vpop.permute.xlu1 %723 }
 0x19b   : > { %1644 = vtanh.f32 %v587_v51  ;;  %v676_v58 = vadd.f32 %v675_v57, %v487_v40  ;;  %v590_v59 = vpop.f32.mrb[4].mxu0 }
 0x19c   : > { %1646 = vtanh.f32 %v674_v52  ;;  %v591_v61 = vadd.f32 %v590_v59, %v492_v48  ;;  %v592_v62 = vpop.f32.mrb[5].mxu0 }
 0x19d   : > { %1648 = vtanh.f32 %v676_v58  ;;  %v679_v63 = vpop.f32.mrb[4].mxu1  ;;  %v593_v0 = vadd.f32 %v592_v62, %v492_v48 }
 0x19e   : > { %1650 = vtanh.f32 %v591_v61  ;;  %v680_v1 = vadd.f32 %v679_v63, %v492_v48  ;;  %v681_v2 = vpop.f32.mrb[5].mxu1  ;;  %v729_v61 = vpop.permute.xlu0 %728 }
 0x19f   : > { %1652 = vtanh.f32 %v593_v0  ;;  %v682_v4 = vadd.f32 %v681_v2, %v492_v48  ;;  %v596_v5 = vpop.f32.mrb[6].mxu0 }
 0x1a0   : > { %v1635_v6 = vpop.eup %1634  ;;  %1654 = vtanh.f32 %v680_v1  ;;  %v597_v44 = vadd.f32 %v596_v5, %v497_v3  ;;  %v598_v45 = vpop.f32.mrb[7].mxu0 }
 0x1a1   : > { %v1637_v46 = vpop.eup %1636  ;;  %1656 = vtanh.f32 %v682_v4  ;;  %v685_v7 = vpop.f32.mrb[6].mxu1  ;;  %v599_v49 = vadd.f32 %v598_v45, %v497_v3 }
 0x1a2   : > { %v1639_v60 = vpop.eup %1638  ;;  %1658 = vtanh.f32 %v597_v44  ;;  %v686_v8 = vadd.f32 %v685_v7, %v497_v3  ;;  %v687_v9 = vpop.f32.mrb[7].mxu1 }
 0x1a3   : > { %v1641_v11 = vpop.eup %1640  ;;  %1660 = vtanh.f32 %v599_v49  ;;  %v688_v12 = vadd.f32 %v687_v9, %v497_v3 }
 0x1a4   : > { %v1643_v13 = vpop.eup %1642  ;;  %1662 = vtanh.f32 %v686_v8 }
 0x1a5   : > { %v1645_v14 = vpop.eup %1644  ;;  %1664 = vtanh.f32 %v688_v12  ;;  %v1505_v15 = vpack.c.bf16 %v1643_v13, %v1635_v6  ;;  %v734_v6 = vpop.permute.xlu1 %733 }
 0x1a6   : > { %v1647_v16 = vpop.eup %1646  ;;  %v1503_v53 = vpack.c.bf16 %v1645_v14, %v1637_v46 }
 0x1a7   : > { %v1649_v54 = vpop.eup %1648  ;;  %v1513_v55 = vpack.c.bf16 %v1647_v16, %v1639_v60 }
 0x1a8   : > { %v1651_v56 = vpop.eup %1650  ;;  %1504 = vmatprep.subr.bf16.mxu0 %v1503_v53  ;;  %v1511_v17 = vpack.c.bf16 %v1649_v54, %v1641_v11 }
 0x1a9   : > { %v1653_v18 = vpop.eup %1652  ;;  %1506 = vmatpush1.bf16.msra.mxu0 %v1505_v15 }
 0x1aa   : > { %v1655_v19 = vpop.eup %1654  ;;  %1512 = vmatprep.subr.bf16.mxu1 %v1511_v17 }
 0x1ab   : > { %v1657_v20 = vpop.eup %1656  ;;  %1514 = vmatpush1.bf16.msra.mxu1 %v1513_v55 }
 0x1ac   : > { %v1659_v21 = vpop.eup %1658 }
 0x1ad   : > { %v1661_v22 = vpop.eup %1660  ;;  %v1509_v25 = vpack.c.bf16 %v1659_v21, %v1651_v56 }
 0x1ae   : > { %v1663_v26 = vpop.eup %1662  ;;  %v1507_v27 = vpack.c.bf16 %v1661_v22, %v1653_v18 }
 0x1af   : > { %v1665_v28 = vpop.eup %1664  ;;  %v1517_v29 = vpack.c.bf16 %v1663_v26, %v1655_v19 }
 0x1b0   : > { %1508 = vmatprep.subr.bf16.mxu0 %v1507_v27  ;;  %v1515_v30 = vpack.c.bf16 %v1665_v28, %v1657_v20 }
 0x1b1   : > { %1510 = vmatpush1.bf16.msra.mxu0 %v1509_v25 }
 0x1b2   : > { %1516 = vmatprep.subr.bf16.mxu1 %v1515_v30 }
 0x1b3   : > { %1518 = vmatpush1.bf16.msra.mxu1 %v1517_v29 }
 0x1b4   : > { %1455 = vmatmul.mubr.msk.f32.vlgmr.msra.gmra.mrb[8].mxu0 %vm499_vm0, %v1447_v31 }
 0x1b5   : > { %818 = vmatprep.mubr.f32.mxu0 %v1796_v10 }
 0x1b6   : > { %1459 = vmatmul.mubr.msk.f32.vlgmr.msra.gmra.mrb[8].mxu1 %vm499_vm0, %v1447_v31 }
 0x1b7   : > { %907 = vmatprep.mubr.f32.mxu1 %v1796_v10 }
 0x1b8   : > { %1456 = vmatmul.mubr.msk.f32.gmra.mrb[10].mxu0 %vm499_vm0, %v1448_v32 }
 0x1b9   : > { %824 = vmatprep.mubr.f32.mxu0 %v1796_v10 }
 0x1ba   : > { %1460 = vmatmul.mubr.msk.f32.gmra.mrb[10].mxu1 %vm499_vm0, %v1448_v32 }
 0x1bb   : > { %913 = vmatprep.mubr.f32.mxu1 %v1796_v10 }
 0x1bc   : > { %1457 = vmatmul.mubr.msk.f32.gmra.mrb[12].mxu0 %vm499_vm0, %v1449_v33 }
 0x1bd   : > { %830 = vmatprep.mubr.f32.mxu0 %v1796_v10 }
 0x1be   : > { %1461 = vmatmul.mubr.msk.f32.gmra.mrb[12].mxu1 %vm499_vm0, %v1449_v33 }
 0x1bf   : > { %919 = vmatprep.mubr.f32.mxu1 %v1796_v10 }
 0x1c0   : > { %1458 = vmatmul.mubr.msk.f32.gmra.mrb[14].mxu0 %vm499_vm0, %v1450_v34 }
 0x1c1   : > { %1048 = vmatprep.mubr.f32.mxu0 %v1796_v10 }
 0x1c2   : > { %1462 = vmatmul.mubr.msk.f32.gmra.mrb[14].mxu1 %vm499_vm0, %v1450_v34  ;;  %v1463_v34 = vld [vmem:[%s2148_s3 + $0x40] sm:$0xff] }
 0x1c3   : > { %1137 = vmatprep.mubr.f32.mxu1 %v1796_v10 }
 0x287   : > { %v814_v36 = vpop.f32.mrb[8].mxu0 }
 0x288   : > { %v815_v37 = vadd.f32 %v814_v36, %v719_v35  ;;  %v816_v38 = vpop.f32.mrb[9].mxu0  ;;  %v1465_v36 = vld [vmem:[%s2148_s3 + $0x50] sm:$0xff] }
 0x289   : > { %v903_v39 = vpop.f32.mrb[8].mxu1  ;;  %v817_v40 = vadd.f32 %v816_v38, %v719_v35  ;;  %v955_v38 = vpop.permute.xlu0 %954 }
 0x28a   : > { %1666 = vtanh.f32 %v815_v37  ;;  %v904_v41 = vadd.f32 %v903_v39, %v719_v35  ;;  %v905_v42 = vpop.f32.mrb[9].mxu1  ;;  %v1466_v37 = vld [vmem:[%s2148_s3 + $0x58] sm:$0xff] }
 0x28b   : > { %1668 = vtanh.f32 %v817_v40  ;;  %v906_v47 = vadd.f32 %v905_v42, %v719_v35  ;;  %v820_v48 = vpop.f32.mrb[10].mxu0  ;;  %v1464_v35 = vld [vmem:[%s2148_s3 + $0x48] sm:$0xff] }
 0x28c   : > { %1670 = vtanh.f32 %v904_v41  ;;  %v821_v50 = vadd.f32 %v820_v48, %v724_v43  ;;  %v822_v51 = vpop.f32.mrb[11].mxu0 }
 0x28d   : > { %1672 = vtanh.f32 %v906_v47  ;;  %v909_v52 = vpop.f32.mrb[10].mxu1  ;;  %v823_v57 = vadd.f32 %v822_v51, %v724_v43 }
 0x28e   : > { %1674 = vtanh.f32 %v821_v50  ;;  %v910_v58 = vadd.f32 %v909_v52, %v724_v43  ;;  %v911_v59 = vpop.f32.mrb[11].mxu1  ;;  %v960_v50 = vpop.permute.xlu1 %959 }
 0x28f   : > { %1676 = vtanh.f32 %v823_v57  ;;  %v912_v62 = vadd.f32 %v911_v59, %v724_v43  ;;  %v826_v63 = vpop.f32.mrb[12].mxu0 }
 0x290   : > { %1678 = vtanh.f32 %v910_v58  ;;  %v827_v0 = vadd.f32 %v826_v63, %v729_v61  ;;  %v828_v1 = vpop.f32.mrb[13].mxu0  ;;  %v965_v63 = vpop.permute.xlu0 %964 }
 0x291   : > { %1680 = vtanh.f32 %v912_v62  ;;  %v915_v2 = vpop.f32.mrb[12].mxu1  ;;  %v829_v3 = vadd.f32 %v828_v1, %v729_v61 }
 0x292   : > { %1682 = vtanh.f32 %v827_v0  ;;  %v916_v4 = vadd.f32 %v915_v2, %v729_v61  ;;  %v917_v5 = vpop.f32.mrb[13].mxu1 }
 0x293   : > { %1684 = vtanh.f32 %v829_v3  ;;  %v918_v44 = vadd.f32 %v917_v5, %v729_v61  ;;  %v832_v45 = vpop.f32.mrb[14].mxu0 }
 0x294   : > { %v1667_v46 = vpop.eup %1666  ;;  %1686 = vtanh.f32 %v916_v4  ;;  %v833_v7 = vadd.f32 %v832_v45, %v734_v6  ;;  %v834_v49 = vpop.f32.mrb[15].mxu0 }
 0x295   : > { %v1669_v60 = vpop.eup %1668  ;;  %1688 = vtanh.f32 %v918_v44  ;;  %v921_v8 = vpop.f32.mrb[14].mxu1  ;;  %v835_v9 = vadd.f32 %v834_v49, %v734_v6 }
 0x296   : > { %v1671_v11 = vpop.eup %1670  ;;  %1690 = vtanh.f32 %v833_v7  ;;  %v922_v12 = vadd.f32 %v921_v8, %v734_v6  ;;  %v923_v13 = vpop.f32.mrb[15].mxu1 }
 0x297   : > { %v1673_v14 = vpop.eup %1672  ;;  %1692 = vtanh.f32 %v835_v9  ;;  %v924_v15 = vadd.f32 %v923_v13, %v734_v6  ;;  %v970_v45 = vpop.permute.xlu1 %969 }
 0x298   : > { %v1675_v16 = vpop.eup %1674  ;;  %1694 = vtanh.f32 %v922_v12 }
 0x299   : > { %v1677_v53 = vpop.eup %1676  ;;  %1696 = vtanh.f32 %v924_v15  ;;  %v1521_v54 = vpack.c.bf16 %v1675_v16, %v1667_v46 }
 0x29a   : > { %v1679_v55 = vpop.eup %1678  ;;  %v1519_v56 = vpack.c.bf16 %v1677_v53, %v1669_v60 }
 0x29b   : > { %v1681_v17 = vpop.eup %1680  ;;  %v1529_v18 = vpack.c.bf16 %v1679_v55, %v1671_v11 }
 0x29c   : > { %v1683_v19 = vpop.eup %1682  ;;  %1520 = vmatprep.subr.bf16.mxu0 %v1519_v56  ;;  %v1527_v20 = vpack.c.bf16 %v1681_v17, %v1673_v14 }
 0x29d   : > { %v1685_v21 = vpop.eup %1684  ;;  %1522 = vmatpush1.bf16.msra.mxu0 %v1521_v54 }
 0x29e   : > { %v1687_v22 = vpop.eup %1686  ;;  %1528 = vmatprep.subr.bf16.mxu1 %v1527_v20 }
 0x29f   : > { %v1689_v25 = vpop.eup %1688  ;;  %1530 = vmatpush1.bf16.msra.mxu1 %v1529_v18 }
 0x2a0   : > { %v1691_v26 = vpop.eup %1690 }
 0x2a1   : > { %v1693_v27 = vpop.eup %1692  ;;  %v1525_v28 = vpack.c.bf16 %v1691_v26, %v1683_v19 }
 0x2a2   : > { %v1695_v29 = vpop.eup %1694  ;;  %v1523_v30 = vpack.c.bf16 %v1693_v27, %v1685_v21 }
 0x2a3   : > { %v1697_v31 = vpop.eup %1696  ;;  %v1533_v32 = vpack.c.bf16 %v1695_v29, %v1687_v22 }
 0x2a4   : > { %1524 = vmatprep.subr.bf16.mxu0 %v1523_v30  ;;  %v1531_v33 = vpack.c.bf16 %v1697_v31, %v1689_v25 }
 0x2a5   : > { %1526 = vmatpush1.bf16.msra.mxu0 %v1525_v28 }
 0x2a6   : > { %1532 = vmatprep.subr.bf16.mxu1 %v1531_v33 }
 0x2a7   : > { %1534 = vmatpush1.bf16.msra.mxu1 %v1533_v32 }
 0x2a8   : > { %1471 = vmatmul.mubr.msk.f32.vlgmr.msra.gmra.mrb[16].mxu0 %vm499_vm0, %v1463_v34 }
 0x2a9   : > { %1054 = vmatprep.mubr.f32.mxu0 %v1796_v10 }
 0x2aa   : > { %1475 = vmatmul.mubr.msk.f32.vlgmr.msra.gmra.mrb[16].mxu1 %vm499_vm0, %v1463_v34 }
 0x2ab   : > { %1143 = vmatprep.mubr.f32.mxu1 %v1796_v10 }
 0x2ac   : > { %1472 = vmatmul.mubr.msk.f32.gmra.mrb[18].mxu0 %vm499_vm0, %v1464_v35 }
 0x2ad   : > { %1060 = vmatprep.mubr.f32.mxu0 %v1796_v10 }
 0x2ae   : > { %1476 = vmatmul.mubr.msk.f32.gmra.mrb[18].mxu1 %vm499_vm0, %v1464_v35 }
 0x2af   : > { %1149 = vmatprep.mubr.f32.mxu1 %v1796_v10 }
 0x2b0   : > { %1473 = vmatmul.mubr.msk.f32.gmra.mrb[20].mxu0 %vm499_vm0, %v1465_v36 }
 0x2b1   : > { %1066 = vmatprep.mubr.f32.mxu0 %v1796_v10 }
 0x2b2   : > { %1477 = vmatmul.mubr.msk.f32.gmra.mrb[20].mxu1 %vm499_vm0, %v1465_v36  ;;  %v1178_v36 = vld [vmem:[%s2150_s5] sm:$0x1] }
 0x2b3   : > { %1155 = vmatprep.mubr.f32.mxu1 %v1796_v10 }
 0x2b4   : > { %1474 = vmatmul.mubr.msk.f32.gmra.mrb[22].mxu0 %vm499_vm0, %v1466_v37 }
 0x2b5   : > { %1246 = vmatprep.mubr.f32.mxu0 %v1796_v10 }
 0x2b6   : > { %1478 = vmatmul.mubr.msk.f32.gmra.mrb[22].mxu1 %vm499_vm0, %v1466_v37  ;;  %v1797_v37 = vmov 1966171168  }
 0x2b7   : > { %1317 = vmatprep.mubr.f32.mxu1 %v1796_v10 }
 0x37b   : > { %v1050_v39 = vpop.f32.mrb[16].mxu0 }
 0x37c   : > { %v1051_v40 = vadd.f32 %v1050_v39, %v955_v38  ;;  %v1052_v41 = vpop.f32.mrb[17].mxu0 }
 0x37d   : > { %v1139_v42 = vpop.f32.mrb[16].mxu1  ;;  %v1053_v43 = vadd.f32 %v1052_v41, %v955_v38 }
 0x37e   : > { %1698 = vtanh.f32 %v1051_v40  ;;  %v1140_v47 = vadd.f32 %v1139_v42, %v955_v38  ;;  %v1141_v48 = vpop.f32.mrb[17].mxu1 }
 0x37f   : > { %1700 = vtanh.f32 %v1053_v43  ;;  %v1142_v51 = vadd.f32 %v1141_v48, %v955_v38  ;;  %v1056_v52 = vpop.f32.mrb[18].mxu0  ;;  %v1331_v38 = vunpack.c.l.s4 %v1797_v37 }
 0x380   : > { %1702 = vtanh.f32 %v1140_v47  ;;  %v1057_v57 = vadd.f32 %v1056_v52, %v960_v50  ;;  %v1058_v58 = vpop.f32.mrb[19].mxu0 }
 0x381   : > { %1704 = vtanh.f32 %v1142_v51  ;;  %v1145_v59 = vpop.f32.mrb[18].mxu1  ;;  %v1059_v61 = vadd.f32 %v1058_v58, %v960_v50  ;;  %v1332_v39 = vunpack.c.0.s8 %v1331_v38 }
 0x382   : > { %1706 = vtanh.f32 %v1057_v57  ;;  %v1146_v10 = vadd.f32 %v1145_v59, %v960_v50  ;;  %v1147_v62 = vpop.f32.mrb[19].mxu1 }
 0x383   : > { %1708 = vtanh.f32 %v1059_v61  ;;  %v1148_v0 = vadd.f32 %v1147_v62, %v960_v50  ;;  %v1062_v1 = vpop.f32.mrb[20].mxu0  ;;  %v1335_v41 = vsub.s32 %v1332_v39, %v1946_v24 }
 0x384   : > { %1710 = vtanh.f32 %v1146_v10  ;;  %v1063_v2 = vadd.f32 %v1062_v1, %v965_v63  ;;  %v1064_v3 = vpop.f32.mrb[21].mxu0 }
 0x385   : > { %1712 = vtanh.f32 %v1148_v0  ;;  %v1151_v4 = vpop.f32.mrb[20].mxu1  ;;  %v1065_v5 = vadd.f32 %v1064_v3, %v965_v63 }
 0x386   : > { %1714 = vtanh.f32 %v1063_v2  ;;  %v1152_v6 = vadd.f32 %v1151_v4, %v965_v63  ;;  %v1153_v44 = vpop.f32.mrb[21].mxu1 }
 0x387   : > { %1716 = vtanh.f32 %v1065_v5  ;;  %v1154_v46 = vadd.f32 %v1153_v44, %v965_v63  ;;  %v1068_v7 = vpop.f32.mrb[22].mxu0 }
 0x388   : > { %v1699_v49 = vpop.eup %1698  ;;  %1718 = vtanh.f32 %v1152_v6  ;;  %v1069_v60 = vadd.f32 %v1068_v7, %v970_v45  ;;  %v1070_v8 = vpop.f32.mrb[23].mxu0 }
 0x389   : > { %v1701_v9 = vpop.eup %1700  ;;  %1720 = vtanh.f32 %v1154_v46  ;;  %v1157_v11 = vpop.f32.mrb[22].mxu1  ;;  %v1071_v12 = vadd.f32 %v1070_v8, %v970_v45 }
 0x38a   : > { %v1703_v13 = vpop.eup %1702  ;;  %1722 = vtanh.f32 %v1069_v60  ;;  %v1158_v14 = vadd.f32 %v1157_v11, %v970_v45  ;;  %v1159_v15 = vpop.f32.mrb[23].mxu1 }
 0x38b   : > { %v1705_v16 = vpop.eup %1704  ;;  %1724 = vtanh.f32 %v1071_v12  ;;  %v1160_v53 = vadd.f32 %v1159_v15, %v970_v45 }
 0x38c   : > { %v1707_v54 = vpop.eup %1706  ;;  %1726 = vtanh.f32 %v1158_v14 }
 0x38d   : > { %v1709_v55 = vpop.eup %1708  ;;  %1728 = vtanh.f32 %v1160_v53  ;;  %v1537_v56 = vpack.c.bf16 %v1707_v54, %v1699_v49 }
 0x38e   : > { %v1711_v17 = vpop.eup %1710  ;;  %v1535_v18 = vpack.c.bf16 %v1709_v55, %v1701_v9 }
 0x38f   : > { %v1713_v19 = vpop.eup %1712  ;;  %v1545_v20 = vpack.c.bf16 %v1711_v17, %v1703_v13 }
 0x390   : > { %v1715_v21 = vpop.eup %1714  ;;  %1536 = vmatprep.subr.bf16.mxu0 %v1535_v18  ;;  %v1543_v22 = vpack.c.bf16 %v1713_v19, %v1705_v16 }
 0x391   : > { %v1717_v25 = vpop.eup %1716  ;;  %1538 = vmatpush1.bf16.msra.mxu0 %v1537_v56 }
 0x392   : > { %v1719_v26 = vpop.eup %1718  ;;  %1544 = vmatprep.subr.bf16.mxu1 %v1543_v22 }
 0x393   : > { %v1721_v27 = vpop.eup %1720  ;;  %1546 = vmatpush1.bf16.msra.mxu1 %v1545_v20 }
 0x394   : > { %v1723_v28 = vpop.eup %1722 }
 0x395   : > { %v1725_v29 = vpop.eup %1724  ;;  %v1541_v30 = vpack.c.bf16 %v1723_v28, %v1715_v21 }
 0x396   : > { %v1727_v31 = vpop.eup %1726  ;;  %v1539_v32 = vpack.c.bf16 %v1725_v29, %v1717_v25 }
 0x397   : > { %v1729_v33 = vpop.eup %1728  ;;  %v1549_v34 = vpack.c.bf16 %v1727_v31, %v1719_v26 }
 0x398   : > { %1540 = vmatprep.subr.bf16.mxu0 %v1539_v32  ;;  %v1547_v35 = vpack.c.bf16 %v1729_v33, %v1721_v27 }
 0x399   : > { %1542 = vmatpush1.bf16.msra.mxu0 %v1541_v30 }
 0x39a   : > { %1548 = vmatprep.subr.bf16.mxu1 %v1547_v35 }
 0x39b   : > { %1550 = vmatpush1.bf16.msra.mxu1 %v1549_v34 }
 0x39c   : > { %1479 = vmatmul.mubr.msk.f32.vlgmr.msra.gmra.mrb[24].mxu0 %vm499_vm0, %v1178_v36 }
 0x39e   : > { %1480 = vmatmul.mubr.msk.f32.vlgmr.msra.gmra.mrb[24].mxu1 %vm499_vm0, %v1178_v36 }
 0x46f   : > { %v1248_v40 = vpop.f32.mrb[24].mxu0 }
 0x470   : > { %v1250_v42 = vpop.f32.mrb[25].mxu0 }
 0x471   : > { %v1319_v43 = vpop.f32.mrb[24].mxu1  ;;  %v1328_v47 = vcombine.low %v1248_v40, %v1250_v42 }
 0x472   : > { %v1321_v48 = vpop.f32.mrb[25].mxu1 }
 0x473   : > { %v1336_v50 = vrot.slane %v1328_v47, %v1335_v41  ;;  %v1329_v51 = vcombine.low %v1319_v43, %v1321_v48 }
 0x475   : > { %v1343_v52 = vrot.slane %v1329_v51, %v1335_v41 }
 0x477   : > { %v1344_v57 = vcombine.low %v1336_v50, %v1343_v52 }
 0x479   : > { %v1351_v58 = vrot.slane %v1344_v57, %v1335_v41 }
 0x47b   : > { %1357 = vst.msk [vmem:[%s245_s29] sm:$0xf] %vm1355_vm1, %v1351_v58 }
 0x47c   : > { %1743 = shalt.err (!%p1740_p3)
}
 0x47d   : > { %s1744_s17 = scalar_lea.hbm %s2103_s12, 64  ;;  %s1748_s20 = scalar_lea.hbm %s2151_s6, 128 }
 0x47e   : > { %p1745_p4 = scmp.ne.s32.totalorder %s2103_s12, %s1744_s17  ;;  %p1749_p9 = scmp.lt.u32.totalorder %s2103_s12, %s2151_s6 }
 0x47f   : > { %p1750_p10 = scmp.lt.u32.totalorder %s1748_s20, %s1744_s17  ;;  %p1752_p12 = scmp.lt.u32.totalorder %s1744_s17, %s2103_s12 }
 0x480   : > { %p1746_p7 = pnand %p1745_p4, %p1872_p5 }
 0x481   : > { %p1751_p11 = por %p1750_p10, %p1749_p9 }
 0x482   : > { %p1747_p8 = pneg %p1746_p7 }
 0x483   : > { %p1753_p13 = por %p1752_p12, %p1751_p11 }
 0x485   : > { %p1754_p0 = pnand %p1753_p13, %p1747_p8 }
 0x487   : > { %1757 = shalt.err (!%p1754_p0)
}
 0x488   : > { %1551 = dma.vmem_to_hbm [thread:$0]  (%p1872_p5), %s2105_s9, 64, %s2103_s12, %s1359_s13  }
 0x489 PF: > { %p1557_p1 = scmp.ge.s32.totalorder %s1792_s24, 2  ;;  %s1385_s29 = sand.u32 1, %s1780_s21  }
 0x48a   : > { %s1386_s10 = scalar_lea.sflag [#allocation3], %s1385_s29 }
 0x48b   : > { %p1554_p2 = pnand %p1557_p1, %p1876_p6 }
 0x48d   : > { %1775 = dma.done.wait (!%p1554_p2), %s1386_s10, 64  }
 0x48e   : > { %1777 = vsyncadd (!%p1554_p2), %s1386_s10, 4294967232  ;;  %p16_p3 = scmp.ge.s32.totalorder %s1859_s27, 4   ;;  %s2154_s21 = smov %s1784_s22 }
 0x48f   : > { %s2155_s22 = smov %s1788_s23  ;;  %s2156_s23 = smov %s1870_s30 }
 0x490   : > { %s2157_s24 = smov %s1859_s27  ;;  %18 = sbr.rel (!%p16_p3) target bundleno = 3 (0x3), region = 83 }
 0x497   :  { %1391 = vsyncpa [#allocation3], 1 }
 0x498   :  { %1393 = vsyncpa [#allocation3 + $0x1], 1 }

</bundles_post_ra>
